<compile_context>
chip_gen: v5e
topology: v5e:2x2
jax: 0.10.0
libtpu: 0.0.40
codegen_flags: <defaults>
</compile_context>

<pallas_src>
import functools

import jax
import jax.numpy as jnp
from jax.experimental import pallas as pl
from jax.experimental.pallas import tpu as pltpu


def _round_up(x, m):
    return ((x + m - 1) // m) * m


def _cdiv(a, b):
    return -(-a // b)


def _choose_tile(B, tb_max):
    """Batch tile: large (amortizes per-step overhead), multiple of 8 sublanes,
    multiple of 128 whenever the grid has >1 block (keeps the (1, TB) output
    block lane-aligned), and split so both v7x TensorCores get work."""
    if B <= 128:
        return _round_up(B, 8)          # single block; block == full array dims
    tb = _round_up(_cdiv(B, 2), 128)    # >= 2 blocks, lane-aligned
    return min(tb, tb_max)


def _mlp_kernel(x_ref, w1_ref, b1_ref, w2_ref, b2_ref, o_ref, *,
                compute_dtype, approx_recip):
    # Layer 1 on the MXU; x is cast in-kernel (cheap VPU op hidden under the
    # matmul), accumulation in f32.
    x = x_ref[...].astype(compute_dtype)
    h = jnp.dot(x, w1_ref[...], preferred_element_type=jnp.float32)
    h = jnp.maximum(h + b1_ref[...], 0.0)

    # TODO(synk): nn.Dropout is identity here (eval-mode inference semantics);
    # training-mode parity would need pltpu.prng_seed/prng_random_bits masking
    # plus 1/(1-p) scaling.

    # Layer 2 (H -> 1), produced lane-dense: q@k^T-style contraction
    #   (8, Hp) . (TB, Hp)^T -> (8, TB)
    # The real w2 lives in row 0 (rows 1..7 are zero padding), so row 0 of the
    # result is the logit row already laid out along lanes — no (TB,1)->(1,TB)
    # relayout needed.
    logits_all = jax.lax.dot_general(
        w2_ref[...], h,
        dimension_numbers=(((1,), (1,)), ((), ())),
        preferred_element_type=jnp.float32)
    logits = logits_all[0:1, :] + b2_ref[0, 0]

    # sigmoid(x) = 1 / (1 + exp(-x)): EUP exp + (approx) reciprocal.
    den = 1.0 + jnp.exp(-logits)
    if approx_recip:
        sig = pl.reciprocal(den, approx=True)
    else:
        sig = 1.0 / den
    o_ref[...] = sig.astype(o_ref.dtype)


def prepare_params(w1, b1, w2, b2, *, compute_dtype=jnp.bfloat16):
    """One-time parameter prep (hoisted out of the forward): pad the hidden dim
    to a lane-dense multiple of 128 (exact: ReLU(0)=0, zero w2 cols contribute
    nothing) and cast the MXU weight to the compute dtype."""
    C_in, H = w1.shape
    Hp = _round_up(max(H, 128), 128)
    w1p = jnp.zeros((C_in, Hp), compute_dtype).at[:, :H].set(
        w1.astype(compute_dtype))
    b1p = jnp.zeros((1, Hp), jnp.float32).at[:, :H].set(
        b1.reshape(1, H).astype(jnp.float32))
    # Layer-2 weight as an 8-row block (row 0 real, rows 1..7 zero) so the
    # transposed dot_general in the kernel has a tile-friendly LHS.
    w2p = jnp.zeros((8, Hp), jnp.float32).at[0, :H].set(
        w2.reshape(H).astype(jnp.float32))
    b2p = b2.reshape(1, 1).astype(jnp.float32)
    return w1p, b1p, w2p, b2p


def mlp_forward(x, params, *, tb_max=2048):
    """x: (B, C_in) in its original dtype (cast happens in-kernel).
    params: output of prepare_params()."""
    w1p, b1p, w2p, b2p = params
    B, C_in = x.shape
    Hp = w1p.shape[1]
    compute_dtype = w1p.dtype
    approx_recip = (compute_dtype != jnp.float32)

    TB = _choose_tile(B, tb_max)
    nb = _cdiv(B, TB)   # no batch padding; tail-block rows are row-wise garbage
                        # and get sliced off below (no cross-row mixing).

    kernel = functools.partial(_mlp_kernel,
                               compute_dtype=compute_dtype,
                               approx_recip=approx_recip)

    out_row = pl.pallas_call(
        kernel,
        out_shape=jax.ShapeDtypeStruct((1, nb * TB), jnp.float32),
        grid=(nb,),
        in_specs=[
            pl.BlockSpec((TB, C_in), lambda i: (i, 0)),   # x: batch-tiled
            pl.BlockSpec((C_in, Hp), lambda i: (0, 0)),   # w1: VMEM-resident
            pl.BlockSpec((1, Hp), lambda i: (0, 0)),      # b1: VMEM-resident
            pl.BlockSpec((8, Hp), lambda i: (0, 0)),      # w2 rows: resident
            pl.BlockSpec(memory_space=pltpu.SMEM),        # b2: scalar in SMEM
        ],
        out_specs=pl.BlockSpec((1, TB), lambda i: (0, i)),  # lane-dense output
        compiler_params=pltpu.CompilerParams(
            dimension_semantics=("parallel",),
            vmem_limit_bytes=32 * 1024 * 1024,
        ),
    )(x, w1p, b1p, w2p, b2p)

    return out_row.reshape(-1)[:B].reshape(B, 1)


def init_params(key, input_channels, hidden_channels, dtype=jnp.float32):
    """Deterministic PyTorch-style (Kaiming-uniform-ish) init."""
    k1, k2, k3, k4 = jax.random.split(key, 4)
    bound1 = 1.0 / jnp.sqrt(input_channels)
    bound2 = 1.0 / jnp.sqrt(hidden_channels)
    w1 = jax.random.uniform(k1, (input_channels, hidden_channels),
                            minval=-bound1, maxval=bound1, dtype=dtype)
    b1 = jax.random.uniform(k2, (1, hidden_channels),
                            minval=-bound1, maxval=bound1, dtype=dtype)
    w2 = jax.random.uniform(k3, (hidden_channels, 1),
                            minval=-bound2, maxval=bound2, dtype=dtype)
    b2 = jax.random.uniform(k4, (1, 1),
                            minval=-bound2, maxval=bound2, dtype=dtype)
    return w1, b1, w2, b2


if __name__ == "__main__":
    input_channels = 16
    hidden_channels = 32
    # dropout = 0.5  # eval-mode -> identity

    key = jax.random.PRNGKey(0)
    kx, kp = jax.random.split(key)

    w1, b1, w2, b2 = init_params(kp, input_channels, hidden_channels)

    def reference(x):
        h = jnp.maximum(x @ w1 + b1, 0.0)
        return jax.nn.sigmoid(h @ w2 + b2)

    # One-time parameter prep (hoisted out of the per-call forward).
    params_f32 = prepare_params(w1, b1, w2, b2, compute_dtype=jnp.float32)
    params_bf16 = prepare_params(w1, b1, w2, b2, compute_dtype=jnp.bfloat16)

    for batch in (8, 200):   # 200 exercises the multi-block grid + tail rows
        x = jax.random.normal(jax.random.fold_in(kx, batch),
                              (batch, input_channels), dtype=jnp.float32)
        ref = reference(x)

        # f32 kernel path: tight tolerance.
        out_f32 = jax.block_until_ready(mlp_forward(x, params_f32))
        assert out_f32.shape == (batch, 1)
        assert jnp.allclose(out_f32, ref, atol=1e-4, rtol=1e-4), \
            f"f32 mismatch at batch={batch}"

        # bf16-input MXU path (f32 accumulation): relaxed tolerance.
        out_bf16 = jax.block_until_ready(mlp_forward(x, params_bf16))
        assert out_bf16.shape == (batch, 1)
        assert jnp.allclose(out_bf16, ref, atol=2e-2, rtol=2e-2), \
            f"bf16 mismatch at batch={batch}"

    print("KERNEL_OK")
</pallas_src>

<mosaic_0001>
module attributes {stable_mosaic.version = 11 : i64} {
  func.func @_mlp_kernel(%arg0: i32, %arg1: memref<8x16xf32, #tpu.memory_space<vmem>>, %arg2: memref<16x128xf32, #tpu.memory_space<vmem>>, %arg3: memref<1x128xf32, #tpu.memory_space<vmem>>, %arg4: memref<8x128xf32, #tpu.memory_space<vmem>>, %arg5: memref<1x1xf32, #tpu.memory_space<smem>>, %arg6: memref<1x8xf32, #tpu.memory_space<vmem>>) attributes {dimension_semantics = [#tpu.dimension_semantics<parallel>], iteration_bounds = array<i64: 1>, scalar_prefetch = 0 : i64, scratch_operands = 0 : i64, tpu.core_type = #tpu.core_type<tc>, window_params = [{transform_indices = @transform_0, window_bounds = array<i64: 8, 16>}, {pipeline_mode = #tpu.pipeline_mode<synchronous>, transform_indices = @transform_1, window_bounds = array<i64: 16, 128>}, {pipeline_mode = #tpu.pipeline_mode<synchronous>, transform_indices = @transform_2, window_bounds = array<i64: 1, 128>}, {pipeline_mode = #tpu.pipeline_mode<synchronous>, transform_indices = @transform_3, window_bounds = array<i64: 8, 128>}, {transform_indices = @transform_4, window_bounds = array<i64: 1, 1>}, {transform_indices = @transform_5, window_bounds = array<i64: 1, 8>}]} {
    %c0 = arith.constant 0 : index
    %c0_0 = arith.constant 0 : index
    %0 = vector.load %arg1[%c0, %c0_0] : memref<8x16xf32, #tpu.memory_space<vmem>>, vector<8x16xf32>
    %c0_1 = arith.constant 0 : index
    %c0_2 = arith.constant 0 : index
    %1 = vector.load %arg2[%c0_1, %c0_2] : memref<16x128xf32, #tpu.memory_space<vmem>>, vector<16x128xf32>
    %cst = arith.constant dense<0.000000e+00> : vector<8x128xf32>
    %2 = tpu.matmul %0, %1, %cst {dimension_numbers = #tpu.dot_dimension_numbers<[1], [0], [0], [1], [0, 0, 1, 1], [], []>} : vector<8x16xf32>, vector<16x128xf32>, vector<8x128xf32> -> vector<8x128xf32>
    %c0_3 = arith.constant 0 : index
    %c0_4 = arith.constant 0 : index
    %3 = vector.load %arg3[%c0_3, %c0_4] : memref<1x128xf32, #tpu.memory_space<vmem>>, vector<1x128xf32>
    %4 = vector.broadcast %3 : vector<1x128xf32> to vector<8x128xf32>
    %5 = arith.addf %2, %4 : vector<8x128xf32>
    %cst_5 = arith.constant 0.000000e+00 : f32
    %6 = vector.broadcast %cst_5 : f32 to vector<8x128xf32>
    %7 = arith.maximumf %5, %6 : vector<8x128xf32>
    %c0_6 = arith.constant 0 : index
    %c0_7 = arith.constant 0 : index
    %8 = vector.load %arg4[%c0_6, %c0_7] : memref<8x128xf32, #tpu.memory_space<vmem>>, vector<8x128xf32>
    %cst_8 = arith.constant dense<0.000000e+00> : vector<8x8xf32>
    %9 = tpu.matmul %8, %7, %cst_8 {dimension_numbers = #tpu.dot_dimension_numbers<[1], [1], [0], [0], [0, 0, 1, 0], [], []>} : vector<8x128xf32>, vector<8x128xf32>, vector<8x8xf32> -> vector<8x8xf32>
    %10 = vector.extract_strided_slice %9 {offsets = [0, 0], sizes = [1, 8], strides = [1, 1]} : vector<8x8xf32> to vector<1x8xf32>
    %c0_9 = arith.constant 0 : index
    %c0_10 = arith.constant 0 : index
    %11 = memref.load %arg5[%c0_9, %c0_10] : memref<1x1xf32, #tpu.memory_space<smem>>
    %12 = vector.broadcast %11 : f32 to vector<1x8xf32>
    %13 = arith.addf %10, %12 : vector<1x8xf32>
    %cst_11 = arith.constant 0.000000e+00 : f32
    %14 = vector.broadcast %cst_11 : f32 to vector<1x8xf32>
    %15 = arith.subf %14, %13 : vector<1x8xf32>
    %16 = math.exp %15 : vector<1x8xf32>
    %cst_12 = arith.constant 1.000000e+00 : f32
    %17 = vector.broadcast %cst_12 : f32 to vector<1x8xf32>
    %18 = arith.addf %17, %16 : vector<1x8xf32>
    %cst_13 = arith.constant 1.000000e+00 : f32
    %19 = vector.broadcast %cst_13 : f32 to vector<1x8xf32>
    %20 = arith.divf %19, %18 : vector<1x8xf32>
    %c0_14 = arith.constant 0 : index
    %c0_15 = arith.constant 0 : index
    %21 = vector.load %arg6[%c0_14, %c0_15] : memref<1x8xf32, #tpu.memory_space<vmem>>, vector<1x8xf32>
    tpu.vector_store %arg6[%c0_14, %c0_15], %20 {strides = array<i32>} : memref<1x8xf32, #tpu.memory_space<vmem>>, vector<1x8xf32>,
    return
  }
  func.func @transform_0(%arg0: i32) -> (i32, i32) {
    %c0_i32 = arith.constant 0 : i32
    %c0_i32_0 = arith.constant 0 : i32
    return %arg0, %c0_i32 : i32, i32
  }
  func.func @transform_1(%arg0: i32) -> (i32, i32) {
    %c0_i32 = arith.constant 0 : i32
    %c0_i32_0 = arith.constant 0 : i32
    %c0_i32_1 = arith.constant 0 : i32
    return %c0_i32, %c0_i32_0 : i32, i32
  }
  func.func @transform_2(%arg0: i32) -> (i32, i32) {
    %c0_i32 = arith.constant 0 : i32
    %c0_i32_0 = arith.constant 0 : i32
    %c0_i32_1 = arith.constant 0 : i32
    return %c0_i32, %c0_i32_0 : i32, i32
  }
  func.func @transform_3(%arg0: i32) -> (i32, i32) {
    %c0_i32 = arith.constant 0 : i32
    %c0_i32_0 = arith.constant 0 : i32
    %c0_i32_1 = arith.constant 0 : i32
    return %c0_i32, %c0_i32_0 : i32, i32
  }
  func.func @transform_4(%arg0: i32) -> (i32, i32) {
    %c0_i32 = arith.constant 0 : i32
    %c0_i32_0 = arith.constant 0 : i32
    %c0_i32_1 = arith.constant 0 : i32
    return %c0_i32, %c0_i32_0 : i32, i32
  }
  func.func @transform_5(%arg0: i32) -> (i32, i32) {
    %c0_i32 = arith.constant 0 : i32
    %c0_i32_0 = arith.constant 0 : i32
    return %c0_i32, %arg0 : i32, i32
  }
}

</mosaic_0001>

<bundles_post_ra>
// kernel: tpu_custom_call.1
= control target key start
LH: loop header
LB: loop body
LE: loop exit
PB: predicated region body
PF: predicated region fallthrough
CT: control target
= control target key end

     0   :  { %11 = vsyncpa [#allocation4], 0  ;;  %s328_s0 = inlined_call_operand.hbm [shape: f32[8,16], index: 0, kind: input, shape index: {}]   ;;  %s329_s1 = inlined_call_operand.hbm [shape: f32[16,128], index: 1, kind: input, shape index: {}]   ;;  %s330_s2 = inlined_call_operand.vmem [shape: f32[1,128], index: 2, kind: input, shape index: {}]   ;;  %s331_s3 = inlined_call_operand.hbm [shape: f32[8,128], index: 3, kind: input, shape index: {}]   ;;  %s332_s4 = inlined_call_operand.<no memory space> [shape: f32[1,1], index: 4, kind: input, shape index: {}]   ;;  %s333_s5 = inlined_call_operand.hbm [shape: f32[1,8], index: 5, kind: output, shape index: {}]  }
   0x1   :  { %12 = vsyncpa [#allocation7], 0  ;;  %s29_s20 = sshll.u32 %s329_s1, 4  ;;  %s30_s20 = int_to_ptr.hbm [resolvable:$true] %s29_s20 }
   0x2   :  { %13 = vsyncpa [#allocation5], 0  ;;  %s274_s21 = smov [#allocation6]   ;;  %s19_s25 = sshll.u32 %s328_s0, 4  ;;  %s20_s25 = int_to_ptr.hbm [resolvable:$true] %s19_s25 }
   0x3   :  { %s31_s22 = sshll.u32 %s274_s21, 4  ;;  %s275_s26 = smov 128   ;;  %s32_s22 = int_to_ptr.vmem [resolvable:$true] %s31_s22 }
   0x4   :  { %s276_s27 = smov 8   ;;  %s277_s28 = smov [#allocation3]  }
   0x5   :  { %37 = dma.hbm_to_vmem [thread:$0]  %s30_s20, 256, %s32_s22, [#allocation7], %s275_s26, %s275_s26, %s276_s27  }
   0x6   :  { %s21_s29 = sshll.u32 %s277_s28, 4  ;;  %s45_s7 = sshll.u32 %s331_s3, 4  ;;  %s22_s29 = int_to_ptr.vmem [resolvable:$true] %s21_s29  ;;  %s46_s7 = int_to_ptr.hbm [resolvable:$true] %s45_s7 }
   0x7   :  { %24 = dma.hbm_to_vmem [thread:$0]  %s20_s25, 128, %s22_s29, [#allocation4]  }
   0x8   :  { %s278_s1 = smov [#allocation8]  }
   0x9   :  { %s47_s8 = sshll.u32 %s278_s1, 4  ;;  %s48_s8 = int_to_ptr.vmem [resolvable:$true] %s47_s8 }
   0xa   :  { %50 = dma.hbm_to_vmem [thread:$0]  %s46_s7, 128, %s48_s8, [#allocation7]  }
   0xb   :  { %268 = dma.done.wait [#allocation4], 128  }
   0xc   :  { %269 = vsyncadd [#allocation4], 4294967168 }
   0xd   :  { %270 = dma.done.wait [#allocation7], 384  }
   0xe   :  { %271 = vsyncadd [#allocation7], 4294966912  ;;  %v67_v0 = vld [vmem:[#allocation6 + $0x8] sm:$0xff]  ;;  %v66_v1 = vld [vmem:[#allocation6] sm:$0xff]  ;;  %vm72_vm0 = vcmask 130048   ;;  %v119_v8 = vstv %s332_s4  ;;  %s149_s4 = sshll.u32 %s333_s5, 4  ;;  %s150_s4 = int_to_ptr.hbm [resolvable:$true] %s149_s4 }
   0xf   :  { %90 = vmatpush.msra.mxu0 %v67_v0  ;;  %v65_v2 = vld [vmem:[#allocation3] sm:$0xff]  ;;  %v97_v7 = vld [vmem:[#allocation8] sm:$0xff]  ;;  %vm140_vm4 = vcmask 57344  }
  0x10   :  { %v167_v3 = vld [vmem:[%s330_s2] ss:$0 sm:$0xff]  ;;  %s279_s2 = smov [#allocation9]  }
  0x11   :  { %91 = vmatpush.msra.mxu0 %v66_v1  ;;  %s147_s11 = sshll.u32 %s279_s2, 4  ;;  %s148_s11 = int_to_ptr.vmem [resolvable:$true] %s147_s11 }
  0x12   :  { %160 = vmatmul.msk.f32.vlgmr.msra.gmra.mxu0 %vm72_vm0, %v65_v2 }
  0x8f   :  { %v93_v4 = vpop.f32.mrf.mxu0 }
  0x90   :  { %v94_v5 = vadd.f32 %v167_v3, %v93_v4 }
  0x92   :  { %v96_v6 = vmax.f32 %v94_v5, 0.0 }
  0x94   :  { %113 = vmatpush.xpose.msra.mxu1 %v96_v6 }
  0x97   :  { %114 = vmatmul.f32.vlgmr.msra.gmra.mxu1 %v97_v7 }
 0x114   :  { %v115_v9 = vpop.f32.mrf.mxu1 }
 0x115   :  { %v120_v10 = vadd.f32 %v119_v8, %v115_v9 }
 0x117   :  { %v121_v11 = vsub.f32 0.0, %v120_v10 }
 0x119   :  { %v122_v12 = vmul.f32 1.442695, %v121_v11 }
 0x11b   :  { %168 = vpow2.f32 %v122_v12 }
 0x121   :  { %v169_v13 = vpop.eup %168 }
 0x122   :  { %v124_v14 = vadd.f32 1.0, %v169_v13 }
 0x124   :  { %170 = vrcp.f32 %v124_v14  ;;  %v136_v18 = vand.u32 2147483648, %v124_v14  ;;  %v134_v20 = vand.u32 2147483647, %v124_v14  ;;  %vm130_vm2 = vweird.f32 %v124_v14 }
 0x126   :  { %v137_v22 = vor.u32 1.1754944e-38, %v136_v18  ;;  %vm135_vm5 = vcmp.eq.f32.partialorder %v134_v20, 8.507059e+37 }
 0x12a   :  { %v171_v15 = vpop.eup %170 }
 0x12b   :  { %v126_v16 = vmul.f32 %v171_v15, %v124_v14  ;;  %vm131_vm1 = vweird.f32 %v171_v15 }
 0x12c   :  { %vm132_vm3 = vmor %vm130_vm2, %vm131_vm1 }
 0x12d   :  { %v127_v17 = vsub.f32 1.0, %v126_v16 }
 0x12f   :  { %v128_v19 = vmul.f32 %v171_v15, %v127_v17 }
 0x131   :  { %v129_v21 = vadd.f32 %v171_v15, %v128_v19 }
 0x133   :  { %v133_v23 = vsel %vm132_vm3, %v171_v15, %v129_v21 }
 0x134   :  { %v138_v24 = vsel %vm135_vm5, %v137_v22, %v133_v23 }
 0x135   :  { %141 = vst.msk [vmem:[#allocation9] sm:$0x1] %vm140_vm4, %v138_v24 }
 0x136   :  { %152 = dma.vmem_to_hbm [thread:$0]  %s148_s11, 16, %s150_s4, [#allocation5]  }
 0x137   :  { %272 = dma.done.wait [#allocation5], 16  }
 0x138   :  { %273 = vsyncadd [#allocation5], 4294967280 }
 0x139   :  { %157 = vsyncpa [#allocation4], 1 }
 0x13a   :  { %158 = vsyncpa [#allocation7], 1 }
 0x13b   :  { %159 = vsyncpa [#allocation5], 1 }

</bundles_post_ra>
